<compile_context>
chip_gen: v6e
topology: v6e:2x2x1
jax: 0.10.0
libtpu: 0.0.40
codegen_flags: <defaults>
</compile_context>

<pallas_src>
import functools

import jax
import jax.numpy as jnp
import numpy as np
from jax.experimental import pallas as pl
from jax.experimental.pallas import tpu as pltpu


def _round_up(x, m):
    return -(-x // m) * m


def _tpu_generation():
    """Best-effort TPU generation sniff: 'v5' / 'v6' / 'v7' / None."""
    try:
        kind = jax.devices()[0].device_kind.lower()
    except Exception:
        return None
    for tag in ("v7", "v6", "v5"):
        if tag in kind:
            return tag
    return None


def _fc_kernel(nsel_ref, x_ref,
               w1_ref, b1_ref, w2_ref, b2_ref, w3_ref, b3_ref,
               out_ref, acc_ref, *, block_rows, bf16_epilogue):
    p = pl.program_id(0)
    i = pl.program_id(1)

    @pl.when(i == 0)
    def _():
        acc_ref[...] = jnp.zeros_like(acc_ref)

    act_dtype = jnp.bfloat16 if bf16_epilogue else jnp.float32

    # Three fused Linear+ReLU layers: bf16 MXU inputs, f32 accumulation.
    # Bias+ReLU epilogue is bf16 on v6e/v7x (bf16 VALU) and f32 on v5e.
    x = x_ref[...]                                                  # (tile, D_in) bf16
    h = jnp.dot(x, w1_ref[...], preferred_element_type=jnp.float32).astype(act_dtype)
    h = jnp.maximum(h + b1_ref[...], 0).astype(jnp.bfloat16)
    h = jnp.dot(h, w2_ref[...], preferred_element_type=jnp.float32).astype(act_dtype)
    h = jnp.maximum(h + b2_ref[...], 0).astype(jnp.bfloat16)
    h = jnp.dot(h, w3_ref[...], preferred_element_type=jnp.float32).astype(act_dtype)
    h3 = jnp.maximum(h + b3_ref[...], 0)                            # (tile, A)

    # Masked row-sum as an MXU reduction: (1, tile) @ (tile, A).
    # The mask is built in-kernel from the scalar-prefetched selected-row
    # count, so no per-tile mask stream is DMA'd from HBM.
    tile_start = (p * pl.num_programs(1) + i) * block_rows
    lane = jax.lax.broadcasted_iota(jnp.int32, (1, block_rows), 1)
    wrow = (lane < (nsel_ref[0] - tile_start)).astype(h3.dtype)
    acc_ref[...] += jnp.dot(wrow, h3, preferred_element_type=jnp.float32)

    @pl.when(i == pl.num_programs(1) - 1)
    def _():
        out_ref[...] = acc_ref[...].reshape(out_ref.shape)


def fc_layer_forward(x, aspect_term_seq, params, *, block_rows=512, max_selected=None):
    """Forward pass of FCLayer.

    x:               (batch, seq, input_size) float array.
    aspect_term_seq: (batch, seq) boolean aspect-term mask.
    params:          (w1, b1, w2, b2, w3, b3, w4, b4); weights pre-transposed
                     to (in, out), biases shaped (1, out).
    max_selected:    optional static upper bound on the number of aspect rows;
                     defaults to batch*seq (always safe).
    The whole function is jit-compatible: row compaction runs on-device.
    """
    assert block_rows % 128 == 0, "block_rows must be a multiple of 128"
    w1, b1, w2, b2, w3, b3, w4, b4 = params
    batch, seq, d_in = x.shape
    n = batch * seq
    h1, h2 = w1.shape[1], w2.shape[1]
    a_dim, c_dim = w3.shape[1], w4.shape[1]

    gen = _tpu_generation()
    num_tc = 2 if gen == "v7" else 1          # v7x: 2 TensorCores/chip, v5e/v6e: 1
    bf16_epilogue = gen != "v5"               # v5e has no bf16 VALU

    mask_flat = jnp.asarray(aspect_term_seq).reshape(-1).astype(bool)

    # "No aspect terms" guard (mirrors the PyTorch ValueError); only checkable
    # when the mask is concrete — under jit the caller must guarantee >= 1 row.
    n_sel_static = None
    try:
        n_sel_static = int(jnp.sum(mask_flat))
    except (jax.errors.ConcretizationTypeError, jax.errors.TracerIntegerConversionError):
        pass
    if n_sel_static == 0:
        raise ValueError('No aspect terms found in the sequence.')

    n_sel = jnp.sum(mask_flat.astype(jnp.int32))      # device scalar (jit-safe)

    # Static tiling: capacity = upper bound on selected rows, rounded to tiles.
    cap = n if max_selected is None else max(1, min(int(max_selected), n))
    block_rows_eff = min(block_rows, _round_up(cap, 128))
    if gen == "v7" and max(h1, h2) >= 2048:
        block_rows_eff = min(block_rows_eff, 256)     # keep intermediates in 64 MiB VMEM
    n_blocks = -(-cap // block_rows_eff)
    p_split = 2 if (num_tc == 2 and n_blocks >= 2) else 1   # split only on megacore
    n_blocks = _round_up(n_blocks, p_split)
    blocks_per_core = n_blocks // p_split
    n_total = n_blocks * block_rows_eff

    # On-device compaction: selected row indices first, gather, zero the
    # padded / non-selected rows (0 * NaN safety), cast to bf16.
    x2 = jnp.asarray(x).reshape(n, d_in)
    order = jnp.argsort(jnp.logical_not(mask_flat).astype(jnp.int32)).astype(jnp.int32)
    take_n = min(n, n_total)
    idx = jnp.zeros((n_total,), jnp.int32).at[:take_n].set(order[:take_n])
    x_sel = jnp.take(x2, idx, axis=0)
    valid = (jnp.arange(n_total, dtype=jnp.int32) < n_sel)[:, None]
    x_sel = jnp.where(valid, x_sel, 0).astype(jnp.bfloat16)

    act_dtype = jnp.bfloat16 if bf16_epilogue else jnp.float32
    w1b, w2b, w3b = (w.astype(jnp.bfloat16) for w in (w1, w2, w3))
    b1c, b2c, b3c = (b.astype(act_dtype) for b in (b1, b2, b3))

    x_spec = pl.BlockSpec((block_rows_eff, d_in),
                          lambda p, i, nsel: (p * blocks_per_core + i, 0))

    def full_spec(a):
        # Resident operand: block index never changes across the grid.
        return pl.BlockSpec(a.shape, lambda p, i, nsel: (0,) * a.ndim)

    # VMEM budget: double-buffered x tiles, resident bf16 weights (Pallas
    # double-buffers them too), biases, chained-matmul intermediates, plus
    # slack; clamped generation-aware (v7x has only 64 MiB physical VMEM).
    bpa = 2 if bf16_epilogue else 4
    wt_bytes = 2 * 2 * sum(int(w.size) for w in (w1b, w2b, w3b))
    b_bytes = 2 * bpa * sum(int(b.size) for b in (b1, b2, b3))
    x_stream = 2 * block_rows_eff * d_in * 2
    inter = block_rows_eff * (h1 + h2 + a_dim) * (4 + bpa + 2)
    vmem_need = wt_bytes + b_bytes + x_stream + inter + 4 * a_dim * 4 + (1 << 20)
    vmem_cap = (56 << 20) if gen == "v7" else (100 << 20)
    vmem_limit = int(min(max(vmem_need, 16 << 20), vmem_cap))

    kernel = functools.partial(_fc_kernel, block_rows=block_rows_eff,
                               bf16_epilogue=bf16_epilogue)
    n_sel_smem = jnp.reshape(n_sel, (1,)).astype(jnp.int32)

    partial_sums = pl.pallas_call(
        kernel,
        out_shape=jax.ShapeDtypeStruct((p_split, 1, a_dim), jnp.float32),
        grid_spec=pltpu.PrefetchScalarGridSpec(
            num_scalar_prefetch=1,
            grid=(p_split, blocks_per_core),
            in_specs=[x_spec,
                      full_spec(w1b), full_spec(b1c),
                      full_spec(w2b), full_spec(b2c),
                      full_spec(w3b), full_spec(b3c)],
            out_specs=pl.BlockSpec((1, 1, a_dim), lambda p, i, nsel: (p, 0, 0)),
            scratch_shapes=[pltpu.VMEM((1, a_dim), jnp.float32)]),
        compiler_params=pltpu.CompilerParams(
            dimension_semantics=("parallel", "arbitrary"),
            vmem_limit_bytes=vmem_limit),
    )(n_sel_smem, x_sel, w1b, b1c, w2b, b2c, w3b, b3c)

    # fc4 is linear, so it commutes with the masked mean:
    #   mean_rows(fc4(h3)) == (mean_rows h3) @ W4 + b4.
    summed_h3 = jnp.sum(partial_sums[:, 0, :], axis=0, keepdims=True)   # (1, A)
    mean_h3 = summed_h3 / n_sel.astype(jnp.float32)
    return mean_h3 @ w4.astype(jnp.float32) + b4.astype(jnp.float32)    # (1, C)


def init_params(key, input_size, hidden1, hidden2, num_aspect_tags, num_sent):
    """nn.Linear-style init (uniform +/- 1/sqrt(fan_in)); weights stored
       pre-transposed as (in, out); biases as (1, out)."""
    dims = [(input_size, hidden1), (hidden1, hidden2),
            (hidden2, num_aspect_tags), (num_aspect_tags, num_sent)]
    params = []
    for (fan_in, fan_out) in dims:
        key, kw, kb = jax.random.split(key, 3)
        bound = 1.0 / np.sqrt(fan_in)
        w = jax.random.uniform(kw, (fan_in, fan_out), jnp.float32, -bound, bound)
        b = jax.random.uniform(kb, (1, fan_out), jnp.float32, -bound, bound)
        params += [w, b]
    return tuple(params)


def _reference(x, mask, params):
    w1, b1, w2, b2, w3, b3, w4, b4 = params
    h = x.reshape(-1, x.shape[-1]).astype(jnp.float32)
    h = jax.nn.relu(h @ w1 + b1)
    h = jax.nn.relu(h @ w2 + b2)
    h = jax.nn.relu(h @ w3 + b3)
    h = h @ w4 + b4
    m = jnp.asarray(mask).reshape(-1).astype(jnp.float32)
    return (m[:, None] * h).sum(0, keepdims=True) / m.sum()


if __name__ == "__main__":
    batch, seq = 2, 8
    input_size, hidden1, hidden2 = 32, 32, 32
    num_aspect_tags, num_sentiment_classes = 16, 8

    key = jax.random.PRNGKey(0)
    kx, km, kp = jax.random.split(key, 3)

    x = jax.random.normal(kx, (batch, seq, input_size), jnp.float32)
    aspect_term_seq = jax.random.bernoulli(km, 0.4, (batch, seq))
    aspect_term_seq = aspect_term_seq.at[0, 0].set(True)   # >= 1 aspect term

    params = init_params(kp, input_size, hidden1, hidden2,
                         num_aspect_tags, num_sentiment_classes)

    # The wrapper is jit-compatible (on-device compaction, no host round-trip).
    fwd = jax.jit(fc_layer_forward)
    pooled = jax.block_until_ready(fwd(x, aspect_term_seq, params))

    ref = _reference(x, aspect_term_seq, params)
    # bf16 MXU inputs with f32 accumulation -> relaxed tolerance vs the f32 ref.
    np.testing.assert_allclose(np.asarray(pooled), np.asarray(ref),
                               rtol=5e-2, atol=5e-2)
    assert pooled.shape == (1, num_sentiment_classes)
    print("KERNEL_OK")
</pallas_src>

<mosaic_0001>
module attributes {stable_mosaic.version = 11 : i64} {
  func.func @_fc_kernel(%arg0: i32, %arg1: i32, %arg2: memref<1xi32, #tpu.memory_space<smem>>, %arg3: memref<128x32xbf16, #tpu.memory_space<vmem>>, %arg4: memref<32x32xbf16, #tpu.memory_space<vmem>>, %arg5: memref<1x32xbf16, #tpu.memory_space<vmem>>, %arg6: memref<32x32xbf16, #tpu.memory_space<vmem>>, %arg7: memref<1x32xbf16, #tpu.memory_space<vmem>>, %arg8: memref<32x16xbf16, #tpu.memory_space<vmem>>, %arg9: memref<1x16xbf16, #tpu.memory_space<vmem>>, %arg10: memref<1x1x16xf32, #tpu.memory_space<vmem>>, %arg11: memref<1x16xf32, #tpu.memory_space<vmem>>) attributes {dimension_semantics = [#tpu.dimension_semantics<parallel>, #tpu.dimension_semantics<arbitrary>], iteration_bounds = array<i64: 1, 1>, scalar_prefetch = 1 : i64, scratch_operands = 1 : i64, tpu.core_type = #tpu.core_type<tc>, window_params = [{transform_indices = @transform_0, window_bounds = array<i64: 128, 32>}, {pipeline_mode = #tpu.pipeline_mode<synchronous>, transform_indices = @transform_1, window_bounds = array<i64: 32, 32>}, {pipeline_mode = #tpu.pipeline_mode<synchronous>, transform_indices = @transform_2, window_bounds = array<i64: 1, 32>}, {pipeline_mode = #tpu.pipeline_mode<synchronous>, transform_indices = @transform_3, window_bounds = array<i64: 32, 32>}, {pipeline_mode = #tpu.pipeline_mode<synchronous>, transform_indices = @transform_4, window_bounds = array<i64: 1, 32>}, {pipeline_mode = #tpu.pipeline_mode<synchronous>, transform_indices = @transform_5, window_bounds = array<i64: 32, 16>}, {pipeline_mode = #tpu.pipeline_mode<synchronous>, transform_indices = @transform_6, window_bounds = array<i64: 1, 16>}, {transform_indices = @transform_7, window_bounds = array<i64: 1, 1, 16>}]} {
    %c0_i32 = arith.constant 0 : i32
    %0 = arith.cmpi eq, %arg1, %c0_i32 : i32
    %1 = arith.extui %0 : i1 to i32
    %c0_i32_0 = arith.constant 0 : i32
    %2 = arith.cmpi ne, %1, %c0_i32_0 : i32
    scf.if %2 {
      %cst_27 = arith.constant 0.000000e+00 : f32
      %46 = vector.broadcast %cst_27 : f32 to vector<1x16xf32>
      %c0_28 = arith.constant 0 : index
      %c0_29 = arith.constant 0 : index
      %47 = vector.load %arg11[%c0_28, %c0_29] : memref<1x16xf32, #tpu.memory_space<vmem>>, vector<1x16xf32>
      tpu.vector_store %arg11[%c0_28, %c0_29], %46 {strides = array<i32>} : memref<1x16xf32, #tpu.memory_space<vmem>>, vector<1x16xf32>,
    } else {
    }
    %c0 = arith.constant 0 : index
    %c0_1 = arith.constant 0 : index
    %3 = vector.load %arg3[%c0, %c0_1] : memref<128x32xbf16, #tpu.memory_space<vmem>>, vector<128x32xbf16>
    %c0_2 = arith.constant 0 : index
    %c0_3 = arith.constant 0 : index
    %4 = vector.load %arg4[%c0_2, %c0_3] : memref<32x32xbf16, #tpu.memory_space<vmem>>, vector<32x32xbf16>
    %cst = arith.constant dense<0.000000e+00> : vector<128x32xf32>
    %5 = tpu.matmul %3, %4, %cst {dimension_numbers = #tpu.dot_dimension_numbers<[1], [0], [0], [1], [0, 0, 1, 1], [], []>} : vector<128x32xbf16>, vector<32x32xbf16>, vector<128x32xf32> -> vector<128x32xf32>
    %6 = arith.truncf %5 : vector<128x32xf32> to vector<128x32xbf16>
    %c0_4 = arith.constant 0 : index
    %c0_5 = arith.constant 0 : index
    %7 = vector.load %arg5[%c0_4, %c0_5] : memref<1x32xbf16, #tpu.memory_space<vmem>>, vector<1x32xbf16>
    %8 = vector.broadcast %7 : vector<1x32xbf16> to vector<128x32xbf16>
    %9 = arith.addf %6, %8 : vector<128x32xbf16>
    %cst_6 = arith.constant 0.000000e+00 : bf16
    %10 = vector.broadcast %cst_6 : bf16 to vector<128x32xbf16>
    %11 = arith.maximumf %9, %10 : vector<128x32xbf16>
    %c0_7 = arith.constant 0 : index
    %c0_8 = arith.constant 0 : index
    %12 = vector.load %arg6[%c0_7, %c0_8] : memref<32x32xbf16, #tpu.memory_space<vmem>>, vector<32x32xbf16>
    %cst_9 = arith.constant dense<0.000000e+00> : vector<128x32xf32>
    %13 = tpu.matmul %11, %12, %cst_9 {dimension_numbers = #tpu.dot_dimension_numbers<[1], [0], [0], [1], [0, 0, 1, 1], [], []>} : vector<128x32xbf16>, vector<32x32xbf16>, vector<128x32xf32> -> vector<128x32xf32>
    %14 = arith.truncf %13 : vector<128x32xf32> to vector<128x32xbf16>
    %c0_10 = arith.constant 0 : index
    %c0_11 = arith.constant 0 : index
    %15 = vector.load %arg7[%c0_10, %c0_11] : memref<1x32xbf16, #tpu.memory_space<vmem>>, vector<1x32xbf16>
    %16 = vector.broadcast %15 : vector<1x32xbf16> to vector<128x32xbf16>
    %17 = arith.addf %14, %16 : vector<128x32xbf16>
    %cst_12 = arith.constant 0.000000e+00 : bf16
    %18 = vector.broadcast %cst_12 : bf16 to vector<128x32xbf16>
    %19 = arith.maximumf %17, %18 : vector<128x32xbf16>
    %c0_13 = arith.constant 0 : index
    %c0_14 = arith.constant 0 : index
    %20 = vector.load %arg8[%c0_13, %c0_14] : memref<32x16xbf16, #tpu.memory_space<vmem>>, vector<32x16xbf16>
    %cst_15 = arith.constant dense<0.000000e+00> : vector<128x16xf32>
    %21 = tpu.matmul %19, %20, %cst_15 {dimension_numbers = #tpu.dot_dimension_numbers<[1], [0], [0], [1], [0, 0, 1, 1], [], []>} : vector<128x32xbf16>, vector<32x16xbf16>, vector<128x16xf32> -> vector<128x16xf32>
    %22 = arith.truncf %21 : vector<128x16xf32> to vector<128x16xbf16>
    %c0_16 = arith.constant 0 : index
    %c0_17 = arith.constant 0 : index
    %23 = vector.load %arg9[%c0_16, %c0_17] : memref<1x16xbf16, #tpu.memory_space<vmem>>, vector<1x16xbf16>
    %24 = vector.broadcast %23 : vector<1x16xbf16> to vector<128x16xbf16>
    %25 = arith.addf %22, %24 : vector<128x16xbf16>
    %cst_18 = arith.constant 0.000000e+00 : bf16
    %26 = vector.broadcast %cst_18 : bf16 to vector<128x16xbf16>
    %27 = arith.maximumf %25, %26 : vector<128x16xbf16>
    %c1_i32 = arith.constant 1 : i32
    %28 = arith.muli %arg0, %c1_i32 : i32
    %29 = arith.addi %28, %arg1 : i32
    %c128_i32 = arith.constant 128 : i32
    %30 = arith.muli %29, %c128_i32 : i32
    %31 = tpu.iota {dimensions = array<i32: 1>} : vector<1x128xi32>
    %c0_19 = arith.constant 0 : index
    %32 = memref.load %arg2[%c0_19] : memref<1xi32, #tpu.memory_space<smem>>
    %33 = arith.subi %32, %30 : i32
    %34 = vector.broadcast %33 : i32 to vector<1x128xi32>
    %35 = arith.cmpi slt, %31, %34 : vector<1x128xi32>
    %36 = arith.extui %35 : vector<1x128xi1> to vector<1x128xi32>
    %37 = arith.sitofp %36 : vector<1x128xi32> to vector<1x128xf32>
    %38 = arith.truncf %37 : vector<1x128xf32> to vector<1x128xbf16>
    %c0_20 = arith.constant 0 : index
    %c0_21 = arith.constant 0 : index
    %39 = vector.load %arg11[%c0_20, %c0_21] : memref<1x16xf32, #tpu.memory_space<vmem>>, vector<1x16xf32>
    %cst_22 = arith.constant dense<0.000000e+00> : vector<1x16xf32>
    %40 = tpu.matmul %38, %27, %cst_22 {dimension_numbers = #tpu.dot_dimension_numbers<[1], [0], [0], [1], [0, 0, 1, 1], [], []>} : vector<1x128xbf16>, vector<128x16xbf16>, vector<1x16xf32> -> vector<1x16xf32>
    %41 = arith.addf %39, %40 : vector<1x16xf32>
    %c0_23 = arith.constant 0 : index
    %c0_24 = arith.constant 0 : index
    %42 = vector.load %arg11[%c0_23, %c0_24] : memref<1x16xf32, #tpu.memory_space<vmem>>, vector<1x16xf32>
    tpu.vector_store %arg11[%c0_23, %c0_24], %41 {strides = array<i32>} : memref<1x16xf32, #tpu.memory_space<vmem>>, vector<1x16xf32>,
    %c0_i32_25 = arith.constant 0 : i32
    %43 = arith.cmpi eq, %arg1, %c0_i32_25 : i32
    %44 = arith.extui %43 : i1 to i32
    %c0_i32_26 = arith.constant 0 : i32
    %45 = arith.cmpi ne, %44, %c0_i32_26 : i32
    scf.if %45 {
      %c0_27 = arith.constant 0 : index
      %c0_28 = arith.constant 0 : index
      %46 = vector.load %arg11[%c0_27, %c0_28] : memref<1x16xf32, #tpu.memory_space<vmem>>, vector<1x16xf32>
      %47 = vector.shape_cast %46 : vector<1x16xf32> to vector<1x1x16xf32>
      %c0_29 = arith.constant 0 : index
      %c0_30 = arith.constant 0 : index
      %c0_31 = arith.constant 0 : index
      %48 = vector.load %arg10[%c0_29, %c0_30, %c0_31] : memref<1x1x16xf32, #tpu.memory_space<vmem>>, vector<1x1x16xf32>
      tpu.vector_store %arg10[%c0_29, %c0_30, %c0_31], %47 {strides = array<i32>} : memref<1x1x16xf32, #tpu.memory_space<vmem>>, vector<1x1x16xf32>,
    } else {
    }
    return
  }
  func.func @transform_0(%arg0: i32, %arg1: i32, %arg2: memref<1xi32, #tpu.memory_space<smem>>) -> (i32, i32) {
    %c1_i32 = arith.constant 1 : i32
    %0 = arith.muli %arg0, %c1_i32 : i32
    %1 = arith.addi %0, %arg1 : i32
    %c0_i32 = arith.constant 0 : i32
    %c0_i32_0 = arith.constant 0 : i32
    return %1, %c0_i32 : i32, i32
  }
  func.func @transform_1(%arg0: i32, %arg1: i32, %arg2: memref<1xi32, #tpu.memory_space<smem>>) -> (i32, i32) {
    %c0_i32 = arith.constant 0 : i32
    %c0_i32_0 = arith.constant 0 : i32
    %c0_i32_1 = arith.constant 0 : i32
    return %c0_i32, %c0_i32_0 : i32, i32
  }
  func.func @transform_2(%arg0: i32, %arg1: i32, %arg2: memref<1xi32, #tpu.memory_space<smem>>) -> (i32, i32) {
    %c0_i32 = arith.constant 0 : i32
    %c0_i32_0 = arith.constant 0 : i32
    %c0_i32_1 = arith.constant 0 : i32
    return %c0_i32, %c0_i32_0 : i32, i32
  }
  func.func @transform_3(%arg0: i32, %arg1: i32, %arg2: memref<1xi32, #tpu.memory_space<smem>>) -> (i32, i32) {
    %c0_i32 = arith.constant 0 : i32
    %c0_i32_0 = arith.constant 0 : i32
    %c0_i32_1 = arith.constant 0 : i32
    return %c0_i32, %c0_i32_0 : i32, i32
  }
  func.func @transform_4(%arg0: i32, %arg1: i32, %arg2: memref<1xi32, #tpu.memory_space<smem>>) -> (i32, i32) {
    %c0_i32 = arith.constant 0 : i32
    %c0_i32_0 = arith.constant 0 : i32
    %c0_i32_1 = arith.constant 0 : i32
    return %c0_i32, %c0_i32_0 : i32, i32
  }
  func.func @transform_5(%arg0: i32, %arg1: i32, %arg2: memref<1xi32, #tpu.memory_space<smem>>) -> (i32, i32) {
    %c0_i32 = arith.constant 0 : i32
    %c0_i32_0 = arith.constant 0 : i32
    %c0_i32_1 = arith.constant 0 : i32
    return %c0_i32, %c0_i32_0 : i32, i32
  }
  func.func @transform_6(%arg0: i32, %arg1: i32, %arg2: memref<1xi32, #tpu.memory_space<smem>>) -> (i32, i32) {
    %c0_i32 = arith.constant 0 : i32
    %c0_i32_0 = arith.constant 0 : i32
    %c0_i32_1 = arith.constant 0 : i32
    return %c0_i32, %c0_i32_0 : i32, i32
  }
  func.func @transform_7(%arg0: i32, %arg1: i32, %arg2: memref<1xi32, #tpu.memory_space<smem>>) -> (i32, i32, i32) {
    %c0_i32 = arith.constant 0 : i32
    %c0_i32_0 = arith.constant 0 : i32
    %c0_i32_1 = arith.constant 0 : i32
    return %arg0, %c0_i32, %c0_i32_0 : i32, i32, i32
  }
}

</mosaic_0001>

<bundles_post_ra>
// kernel: fc_layer_forward.1
= control target key start
LH: loop header
LB: loop body
LE: loop exit
PB: predicated region body
PF: predicated region fallthrough
CT: control target
= control target key end

     0   :  { %vm129_vm0 = vcmask 261120   ;;  %v263_v13 = vlaneseq  ;;  %v873_v31 = vmov 0   ;;  %vm875_vm1 = vmmov 0   ;;  %s1047_s2 = inlined_call_operand.vmem [shape: bf16[32,32], index: 2, kind: input, shape index: {}]   ;;  %s1048_s1 = inlined_call_operand.vmem [shape: bf16[128,32], index: 1, kind: input, shape index: {}]   ;;  %s1049_s4 = inlined_call_operand.vmem [shape: bf16[32,32], index: 4, kind: input, shape index: {}]   ;;  %s1050_s6 = inlined_call_operand.vmem [shape: bf16[32,16], index: 6, kind: input, shape index: {}]   ;;  %s1051_s3 = inlined_call_operand.vmem [shape: bf16[1,32], index: 3, kind: input, shape index: {}]   ;;  %s1052_s5 = inlined_call_operand.vmem [shape: bf16[1,32], index: 5, kind: input, shape index: {}]   ;;  %s1053_s7 = inlined_call_operand.vmem [shape: bf16[1,16], index: 7, kind: input, shape index: {}]   ;;  %s1054_s0 = inlined_call_operand.<no memory space> [shape: s32[1], index: 0, kind: input, shape index: {}]   ;;  %s1055_s8 = inlined_call_operand.vmem [shape: f32[1,1,16], index: 8, kind: output, shape index: {}]  }
   0x1   :  { %v859_v0 = vld [vmem:[%s1047_s2 + $0x8] sm:$0xff]   ;;  %v860_v1 = vld [vmem:[%s1047_s2] sm:$0xff]   ;;  %v863_v4 = vld [vmem:[%s1048_s1 + $0x10] sm:$0xff]   ;;  %vm55_vm2 = vcmask 122880  }
   0x2   :  { %771 = vmatprep.subr.bf16.mxu0 %v859_v0  ;;  %v861_v2 = vld [vmem:[%s1048_s1] sm:$0xff]   ;;  %851 = vmatprep.subr.bf16.mxu1 %v859_v0  ;;  %v862_v3 = vld [vmem:[%s1048_s1 + $0x8] sm:$0xff]   ;;  %v867_v5 = vld [vmem:[%s1048_s1 + $0x30] sm:$0xff]   ;;  %v264_v14 = vshrl.u32 %v263_v13, 7 }
   0x3   :  { %772 = vmatpush3.bf16.msra.mxu0 %v859_v0  ;;  %853 = vmatpush3.bf16.msra.mxu1 %v859_v0  ;;  %v868_v6 = vld [vmem:[%s1048_s1 + $0x38] sm:$0xff]   ;;  %v865_v8 = vld [vmem:[%s1048_s1 + $0x20] sm:$0xff]   ;;  %v866_v9 = vld [vmem:[%s1048_s1 + $0x28] sm:$0xff]  }
   0x4   :  { %773 = vmatprep.subr.bf16.mxu0 %v860_v1  ;;  %775 = vmatprep.mubr.msk.bf16.mxu0 %vm129_vm0, %v861_v2  ;;  %v864_v7 = vld [vmem:[%s1048_s1 + $0x18] sm:$0xff]   ;;  %v869_v10 = vld [vmem:[%s1049_s4 + $0x8] sm:$0xff]   ;;  %v870_v11 = vld [vmem:[%s1049_s4] sm:$0xff]   ;;  %v973_v18 = vsub.s32 0, %v264_v14 }
   0x5   :  { %852 = vmatprep.subr.bf16.mxu1 %v860_v1  ;;  %787 = vmatprep.mubr.msk.bf16.mxu1 %vm129_vm0, %v867_v5  ;;  %v871_v12 = vld [vmem:[%s1050_s6 + $0x8] sm:$0xff]   ;;  %v259_v15 = vld [vmem:[%s1051_s3] sm:$0x1] }
   0x6   :  { %v261_v17 = vpack.i.b16 %v259_v15, %v259_v15  ;;  %v872_v60 = vld [vmem:[%s1050_s6] sm:$0xff]  }
   0x7   :  { %774 = vmatpush3.bf16.msra.mxu0 %v860_v1  ;;  %854 = vmatpush3.bf16.msra.mxu1 %v860_v1  ;;  %v428_v61 = vld [vmem:[%s1052_s5] sm:$0x1] }
   0x8   :  { %791 = vmatprep.subr.bf16.mxu1 %v869_v10  ;;  %811 = vmatprep.subr.bf16.mxu0 %v871_v12  ;;  %v266_v21 = vrot.slane %v261_v17, %v973_v18  ;;  %v430_v63 = vpack.i.b16 %v428_v61, %v428_v61 }
   0xa   :  { %776 = vmatmul.mubr.msk.bf16.vlgmr.msra.gmra.mxu0 %vm129_vm0, %v862_v3  ;;  %788 = vmatmul.mubr.msk.bf16.vlgmr.msra.gmra.mxu1 %vm129_vm0, %v868_v6  ;;  %v435_v2 = vrot.slane %v430_v63, %v973_v18 }
   0xb   :  { %779 = vmatprep.mubr.msk.bf16.mxu0 %vm129_vm0, %v863_v4  ;;  %792 = vmatpush3.bf16.msra.mxu1 %v869_v10 }
   0xc   :  { %793 = vmatprep.subr.bf16.mxu1 %v870_v11  ;;  %812 = vmatpush3.bf16.msra.mxu0 %v871_v12 }
   0xd   :  { %813 = vmatprep.subr.bf16.mxu0 %v872_v60 }
   0xf   :  { %794 = vmatpush3.bf16.msra.mxu1 %v870_v11 }
  0x10   :  { %814 = vmatpush3.bf16.msra.mxu0 %v872_v60 }
  0x12   :  { %780 = vmatmul.mubr.msk.bf16.gmra.mxu0 %vm129_vm0, %v864_v7 }
  0x13   :  { %783 = vmatprep.mubr.msk.bf16.mxu0 %vm129_vm0, %v865_v8 }
  0x1a   :  { %784 = vmatmul.mubr.msk.bf16.gmra.mxu0 %vm129_vm0, %v866_v9 }
  0xca   :  { %v777_v16 = vpop.f32.mrf.mxu0  ;;  %v789_v22 = vpop.f32.mrf.mxu1 }
  0xcc   :  { %v188_v19 = vpop.f32.mrf.mxu0  ;;  %v236_v28 = vpop.f32.mrf.mxu1 }
  0xce   :  { %v778_v20 = vpop.f32.mrf.mxu0  ;;  %v790_v35 = vpop.f32.mrf.mxu1 }
  0xcf   :  { %v252_v23 = vpack.c.bf16 %v778_v20, %v777_v16  ;;  %v258_v57 = vpack.c.bf16 %v790_v35, %v789_v22 }
  0xd0   :  { %v191_v24 = vpop.f32.mrf.mxu0  ;;  %v239_v41 = vpop.f32.mrf.mxu1 }
  0xd1   :  { %v251_v25 = vpack.c.bf16 %v191_v24, %v188_v19  ;;  %v268_v26 = vadd.bf16 %v266_v21, %v252_v23  ;;  %v257_v45 = vpack.c.bf16 %v239_v41, %v236_v28  ;;  %v274_v58 = vadd.bf16 %v266_v21, %v258_v57 }
  0xd2   :  { %v781_v27 = vpop.f32.mrf.mxu0 }
  0xd3   :  { %v267_v29 = vadd.bf16 %v266_v21, %v251_v25  ;;  %v276_v33 = vmax.bf16 %v873_v31, %v268_v26  ;;  %v273_v51 = vadd.bf16 %v266_v21, %v257_v45  ;;  %v282_v59 = vmax.bf16 %v873_v31, %v274_v58 }
  0xd4   :  { %v204_v30 = vpop.f32.mrf.mxu0 }
  0xd5   :  { %v275_v32 = vmax.bf16 %v873_v31, %v267_v29  ;;  %v281_v55 = vmax.bf16 %v873_v31, %v273_v51 }
  0xd6   :  { %v782_v34 = vpop.f32.mrf.mxu0 }
  0xd7   :  { %v254_v36 = vpack.c.bf16 %v782_v34, %v781_v27  ;;  %795 = vmatprep.mubr.msk.bf16.mxu1 %vm129_vm0, %v275_v32 }
  0xd8   :  { %v207_v37 = vpop.f32.mrf.mxu0  ;;  %796 = vmatmul.mubr.msk.bf16.vlgmr.msra.gmra.mxu1 %vm129_vm0, %v276_v33 }
  0xd9   :  { %v253_v38 = vpack.c.bf16 %v207_v37, %v204_v30  ;;  %v270_v39 = vadd.bf16 %v266_v21, %v254_v36 }
  0xda   :  { %v785_v40 = vpop.f32.mrf.mxu0 }
  0xdb   :  { %v269_v42 = vadd.bf16 %v266_v21, %v253_v38  ;;  %v278_v46 = vmax.bf16 %v873_v31, %v270_v39 }
  0xdc   :  { %v220_v43 = vpop.f32.mrf.mxu0 }
  0xdd   :  { %v277_v44 = vmax.bf16 %v873_v31, %v269_v42 }
  0xde   :  { %v786_v47 = vpop.f32.mrf.mxu0 }
  0xdf   :  { %v256_v48 = vpack.c.bf16 %v786_v47, %v785_v40  ;;  %799 = vmatprep.mubr.msk.bf16.mxu1 %vm129_vm0, %v277_v44 }
  0xe0   :  { %v223_v49 = vpop.f32.mrf.mxu0  ;;  %800 = vmatmul.mubr.msk.bf16.gmra.mxu1 %vm129_vm0, %v278_v46 }
  0xe1   :  { %v255_v50 = vpack.c.bf16 %v223_v49, %v220_v43  ;;  %v272_v52 = vadd.bf16 %v266_v21, %v256_v48  ;;  %v874_v43 = vmov 0.0  }
  0xe2   :  { %831 = vmatprep.subr.bf16.mxu1 %v874_v43  ;;  %56 = vst.msk [vmem:[#allocation2] sm:$0x1] %vm55_vm2, %v874_v43 }
  0xe3   :  { %v271_v53 = vadd.bf16 %v266_v21, %v255_v50  ;;  %v280_v56 = vmax.bf16 %v873_v31, %v272_v52 }
  0xe5   :  { %v279_v54 = vmax.bf16 %v873_v31, %v271_v53 }
  0xe7   :  { %803 = vmatprep.mubr.msk.bf16.mxu1 %vm129_vm0, %v279_v54 }
  0xe8   :  { %804 = vmatmul.mubr.msk.bf16.gmra.mxu1 %vm129_vm0, %v280_v56 }
  0xe9   :  { %807 = vmatprep.mubr.msk.bf16.mxu1 %vm129_vm0, %v281_v55  ;;  %v597_v55 = vld [vmem:[%s1053_s7] sm:$0x1] }
  0xea   :  { %v599_v58 = vpack.i.b16 %v597_v55, %v597_v55 }
  0xec   :  { %v604_v61 = vrot.slane %v599_v58, %v973_v18 }
  0xf0   :  { %808 = vmatmul.mubr.msk.bf16.gmra.mxu1 %vm129_vm0, %v282_v59 }
  0xf1   :  { %847 = vmatprep.mubr.msk.bf16.mxu1 %vm875_vm1, %v874_v43 }
 0x198   :  { %v797_v62 = vpop.f32.mrf.mxu1 }
 0x19a   :  { %v357_v0 = vpop.f32.mrf.mxu1 }
 0x19c   :  { %v798_v1 = vpop.f32.mrf.mxu1 }
 0x19d   :  { %v421_v3 = vpack.c.bf16 %v798_v1, %v797_v62 }
 0x19e   :  { %v360_v4 = vpop.f32.mrf.mxu1 }
 0x19f   :  { %v420_v5 = vpack.c.bf16 %v360_v4, %v357_v0  ;;  %v437_v6 = vadd.bf16 %v435_v2, %v421_v3 }
 0x1a0   :  { %v801_v7 = vpop.f32.mrf.mxu1 }
 0x1a1   :  { %v436_v8 = vadd.bf16 %v435_v2, %v420_v5  ;;  %v445_v11 = vmax.bf16 %v873_v31, %v437_v6 }
 0x1a2   :  { %v373_v9 = vpop.f32.mrf.mxu1 }
 0x1a3   :  { %v444_v10 = vmax.bf16 %v873_v31, %v436_v8 }
 0x1a4   :  { %v802_v12 = vpop.f32.mrf.mxu1 }
 0x1a5   :  { %v423_v14 = vpack.c.bf16 %v802_v12, %v801_v7  ;;  %815 = vmatprep.mubr.msk.bf16.mxu0 %vm129_vm0, %v444_v10 }
 0x1a6   :  { %v376_v15 = vpop.f32.mrf.mxu1  ;;  %816 = vmatmul.mubr.msk.bf16.vlgmr.msra.gmra.mxu0 %vm129_vm0, %v445_v11 }
 0x1a7   :  { %v422_v16 = vpack.c.bf16 %v376_v15, %v373_v9  ;;  %v439_v17 = vadd.bf16 %v435_v2, %v423_v14 }
 0x1a8   :  { %v805_v19 = vpop.f32.mrf.mxu1 }
 0x1a9   :  { %v438_v20 = vadd.bf16 %v435_v2, %v422_v16  ;;  %v447_v23 = vmax.bf16 %v873_v31, %v439_v17 }
 0x1aa   :  { %v389_v21 = vpop.f32.mrf.mxu1 }
 0x1ab   :  { %v446_v22 = vmax.bf16 %v873_v31, %v438_v20 }
 0x1ac   :  { %v806_v24 = vpop.f32.mrf.mxu1 }
 0x1ad   :  { %v425_v25 = vpack.c.bf16 %v806_v24, %v805_v19  ;;  %819 = vmatprep.mubr.msk.bf16.mxu0 %vm129_vm0, %v446_v22  ;;  %v627_v24 = vstv %s1054_s0 }
 0x1ae   :  { %v392_v26 = vpop.f32.mrf.mxu1  ;;  %820 = vmatmul.mubr.msk.bf16.gmra.mxu0 %vm129_vm0, %v447_v23 }
 0x1af   :  { %v424_v27 = vpack.c.bf16 %v392_v26, %v389_v21  ;;  %v441_v28 = vadd.bf16 %v435_v2, %v425_v25  ;;  %v624_v21 = vand.u32 127, %v263_v13  ;;  %v876_v26 = vmov 1.0|1.0  }
 0x1b0   :  { %v809_v29 = vpop.f32.mrf.mxu1 }
 0x1b1   :  { %v440_v30 = vadd.bf16 %v435_v2, %v424_v27  ;;  %v449_v34 = vmax.bf16 %v873_v31, %v441_v28  ;;  %vm628_vm3 = vcmp.lt.s32.totalorder %v624_v21, %v627_v24  ;;  %v632_v27 = vld [vmem:[#allocation2] sm:$0x1] }
 0x1b2   :  { %v405_v32 = vpop.f32.mrf.mxu1  ;;  %vm730_vm4 = vmpackc.low %vm628_vm3, %vm628_vm3 }
 0x1b3   :  { %v448_v33 = vmax.bf16 %v873_v31, %v440_v30 }
 0x1b4   :  { %v810_v35 = vpop.f32.mrf.mxu1 }
 0x1b5   :  { %v427_v36 = vpack.c.bf16 %v810_v35, %v809_v29  ;;  %823 = vmatprep.mubr.msk.bf16.mxu0 %vm129_vm0, %v448_v33 }
 0x1b6   :  { %v408_v37 = vpop.f32.mrf.mxu1  ;;  %824 = vmatmul.mubr.msk.bf16.gmra.mxu0 %vm129_vm0, %v449_v34 }
 0x1b7   :  { %v426_v38 = vpack.c.bf16 %v408_v37, %v405_v32  ;;  %v443_v39 = vadd.bf16 %v435_v2, %v427_v36 }
 0x1b9   :  { %v442_v40 = vadd.bf16 %v435_v2, %v426_v38  ;;  %v451_v42 = vmax.bf16 %v873_v31, %v443_v39 }
 0x1bb   :  { %v450_v41 = vmax.bf16 %v873_v31, %v442_v40 }
 0x1bd   :  { %827 = vmatprep.mubr.msk.bf16.mxu0 %vm129_vm0, %v450_v41 }
 0x1be   :  { %828 = vmatmul.mubr.msk.bf16.gmra.mxu0 %vm129_vm0, %v451_v42 }
 0x266   :  { %v817_v44 = vpop.f32.mrf.mxu0 }
 0x268   :  { %v526_v45 = vpop.f32.mrf.mxu0 }
 0x26a   :  { %v818_v46 = vpop.f32.mrf.mxu0 }
 0x26b   :  { %v590_v14 = vpack.c.bf16 %v818_v46, %v817_v44 }
 0x26c   :  { %v529_v47 = vpop.f32.mrf.mxu0 }
 0x26d   :  { %v606_v17 = vadd.bf16 %v604_v61, %v590_v14  ;;  %v589_v19 = vpack.c.bf16 %v529_v47, %v526_v45 }
 0x26e   :  { %v821_v48 = vpop.f32.mrf.mxu0 }
 0x26f   :  { %v614_v22 = vmax.bf16 %v873_v31, %v606_v17  ;;  %v605_v23 = vadd.bf16 %v604_v61, %v589_v19 }
 0x270   :  { %v542_v49 = vpop.f32.mrf.mxu0 }
 0x271   :  { %v613_v25 = vmax.bf16 %v873_v31, %v605_v23 }
 0x272   :  { %v822_v50 = vpop.f32.mrf.mxu0 }
 0x273   :  { %v592_v8 = vpack.c.bf16 %v822_v50, %v821_v48 }
 0x274   :  { %v545_v51 = vpop.f32.mrf.mxu0 }
 0x275   :  { %v608_v10 = vadd.bf16 %v604_v61, %v592_v8  ;;  %v591_v11 = vpack.c.bf16 %v545_v51, %v542_v49 }
 0x276   :  { %v825_v52 = vpop.f32.mrf.mxu0 }
 0x277   :  { %v616_v15 = vmax.bf16 %v873_v31, %v608_v10  ;;  %v607_v16 = vadd.bf16 %v604_v61, %v591_v11 }
 0x278   :  { %v558_v53 = vpop.f32.mrf.mxu0 }
 0x279   :  { %v615_v20 = vmax.bf16 %v873_v31, %v607_v16 }
 0x27a   :  { %v826_v54 = vpop.f32.mrf.mxu0 }
 0x27b   :  { %v594_v2 = vpack.c.bf16 %v826_v54, %v825_v52 }
 0x27c   :  { %v561_v56 = vpop.f32.mrf.mxu0 }
 0x27d   :  { %v610_v5 = vadd.bf16 %v604_v61, %v594_v2  ;;  %v593_v6 = vpack.c.bf16 %v561_v56, %v558_v53 }
 0x27e   :  { %v829_v57 = vpop.f32.mrf.mxu0 }
 0x27f   :  { %v618_v18 = vmax.bf16 %v873_v31, %v610_v5  ;;  %v609_v9 = vadd.bf16 %v604_v61, %v593_v6 }
 0x280   :  { %v574_v59 = vpop.f32.mrf.mxu0 }
 0x281   :  { %v617_v12 = vmax.bf16 %v873_v31, %v609_v9 }
 0x282   :  { %v830_v60 = vpop.f32.mrf.mxu0 }
 0x283   :  { %v596_v62 = vpack.c.bf16 %v830_v60, %v829_v57 }
 0x284   :  { %v577_v63 = vpop.f32.mrf.mxu0 }
 0x285   :  { %v612_v0 = vadd.bf16 %v604_v61, %v596_v62  ;;  %v595_v1 = vpack.c.bf16 %v577_v63, %v574_v59 }
 0x287   :  { %v620_v3 = vmax.bf16 %v873_v31, %v612_v0  ;;  %v611_v4 = vadd.bf16 %v604_v61, %v595_v1 }
 0x289   :  { %832 = vmatpush3.bf16.msra.mxu1 %v620_v3  ;;  %v619_v7 = vmax.bf16 %v873_v31, %v611_v4 }
 0x28a   :  { %833 = vmatprep.subr.bf16.mxu1 %v874_v43 }
 0x28d   :  { %834 = vmatpush3.bf16.msra.mxu1 %v619_v7 }
 0x28e   :  { %835 = vmatprep.subr.bf16.mxu1 %v874_v43 }
 0x291   :  { %836 = vmatpush3.bf16.msra.mxu1 %v618_v18 }
 0x292   :  { %837 = vmatprep.subr.bf16.mxu1 %v874_v43 }
 0x295   :  { %838 = vmatpush3.bf16.msra.mxu1 %v617_v12 }
 0x296   :  { %839 = vmatprep.subr.bf16.mxu1 %v874_v43 }
 0x299   :  { %840 = vmatpush3.bf16.msra.mxu1 %v616_v15 }
 0x29a   :  { %841 = vmatprep.subr.bf16.mxu1 %v874_v43 }
 0x29d   :  { %842 = vmatpush3.bf16.msra.mxu1 %v615_v20 }
 0x29e   :  { %843 = vmatprep.subr.bf16.mxu1 %v874_v43 }
 0x2a1   :  { %844 = vmatpush3.bf16.msra.mxu1 %v614_v22 }
 0x2a2   :  { %845 = vmatprep.subr.bf16.mxu1 %v874_v43 }
 0x2a5   :  { %846 = vmatpush3.bf16.msra.mxu1 %v613_v25 }
 0x2a8   :  { %848 = vmatmul.mubr.msk.bf16.vlgmr.msra.gmra.mxu1 %vm730_vm4, %v876_v26 }
 0x368   :  { %v667_v28 = vpop.f32.mrf.mxu1 }
 0x369   :  { %v673_v13 = vadd.f32 %v667_v28, %v632_v27 }
 0x36a   :  { %v849_v29 = vpop.f32.mrf.mxu1 }
 0x36b   :  { %675 = vst.msk [vmem:[#allocation2] sm:$0x1] %vm55_vm2, %v673_v13 }
 0x36c   :  { %v670_v30 = vpop.f32.mrf.mxu1 }
 0x36e   :  { %v850_v32 = vpop.f32.mrf.mxu1 }
 0x372   :  { %v679_v33 = vld [vmem:[#allocation2] sm:$0x1] }
 0x373   :  { %680 = vst.msk [vmem:[%s1055_s8] sm:$0x1] %vm55_vm2, %v679_v33 }

</bundles_post_ra>
